<compile_context>
chip_gen: v5e
topology: v5e:2x2
jax: 0.10.0
libtpu: 0.0.40
codegen_flags: <defaults>
</compile_context>

<pallas_src>
import jax
import jax.numpy as jnp
from jax.experimental import pallas as pl
from jax.experimental.pallas import tpu as pltpu

# ---------------- configuration (mirrors module / args hyper-params) ---------
B = 2            # batch
L = 16           # input sequence length (must be even)
C = 4            # in_planes
HID = 2          # args.hidden_size
CH = C * HID     # hidden channels of the lifting convs
K1 = 3           # args.kernel (odd so the lifting lengths line up)
DIL = 1          # args.dilation
K2 = 3           # second conv kernel size (hard-coded 3 in the module)
PAD = DIL * (K1 - 1) // 2 + 1        # ReplicationPad1d amount
T = L // 2                           # length after even/odd split
TP = T + 2 * PAD                     # padded length
T1 = TP - DIL * (K1 - 1)             # length after the first conv
assert T1 - (K2 - 1) == T, "lifting conv lengths must match the split length"

BT = B * T                           # batch folded into the lane (time) axis
BT1 = B * T1

REGU_DETAILS = 0.1
REGU_APPROX = 0.1
BN_EPS = 1e-5

N_HALF = float(B * C * T)            # number of elements in d / c
N_FULL = float(B * L * C)            # number of elements in x


def _sum11(a):
    """Full reduction of a 2-D array to (1, 1): lane reduce then sublane reduce."""
    return jnp.sum(jnp.sum(a, axis=1, keepdims=True), axis=0, keepdims=True)


# ---------------- the single fused kernel -------------------------------------
def _level_wasn_kernel(x_ref,
                       pw1_ref, pb1_ref, pw2_ref, pb2_ref,
                       uw1_ref, ub1_ref, uw2_ref, ub2_ref,
                       scale_ref, shift_ref, w1x1_ref,
                       out_ref, d_ref, r_ref):
    """Gridless step: full LevelWASN forward for the whole batch, (C, B*T) layout."""
    # -------- hoisted invariant loads (each array read exactly once) ----------
    xe = x_ref[0]                        # (C, BT)  even samples
    xo = x_ref[1]                        # (C, BT)  odd samples
    pw1 = pw1_ref[...]; pb1 = pb1_ref[...]       # (CH, K1*C), (CH, 1)
    pw2 = pw2_ref[...]; pb2 = pb2_ref[...]       # (C, K2*CH), (C, 1)
    uw1 = uw1_ref[...]; ub1 = ub1_ref[...]
    uw2 = uw2_ref[...]; ub2 = ub2_ref[...]
    scale = scale_ref[...]               # (C, 1)  eval-mode BatchNorm folded
    shift = shift_ref[...]               # (C, 1)
    w1x1 = w1x1_ref[...]                 # (C, C)

    def lift(src, w1, b1, w2, b2):
        # src: (C, B*T).  ReplicationPad1d per batch segment, built as a VALUE
        # (edge-column broadcast + concatenate) -- no scratch, no store/reload.
        segs = []
        for b in range(B):
            s = src[:, b * T:(b + 1) * T]                      # (C, T)
            segs.append(jnp.concatenate(
                [jnp.broadcast_to(s[:, 0:1], (C, PAD)),
                 s,
                 jnp.broadcast_to(s[:, T - 1:T], (C, PAD))], axis=1))   # (C, TP)

        # im2col slab for Conv1d(C -> CH, kernel=K1, dilation=DIL): one dot.
        x1 = jnp.concatenate(
            [jnp.concatenate([seg[:, k * DIL:k * DIL + T1] for seg in segs], axis=1)
             for k in range(K1)], axis=0)                      # (K1*C, B*T1)
        h = jnp.dot(w1, x1, preferred_element_type=jnp.float32) + b1    # (CH, B*T1)
        h = jnp.where(h > 0, h, 0.01 * h)                      # LeakyReLU(0.01)
        # Dropout: identity in eval mode.

        # im2col slab for Conv1d(CH -> C, kernel=K2): one dot.
        x2 = jnp.concatenate(
            [jnp.concatenate([h[:, b * T1 + k:b * T1 + k + T] for b in range(B)],
                             axis=1)
             for k in range(K2)], axis=0)                      # (K2*CH, B*T)
        y = jnp.dot(w2, x2, preferred_element_type=jnp.float32) + b2    # (C, B*T)
        return jnp.tanh(y)

    d = xo - lift(xe, pw1, pb1, pw2, pb2)        # d = x_odd  - P(x_even)
    c = xe + lift(d, uw1, ub1, uw2, ub2)         # c = x_even + U(d)

    d_ref[...] = d                               # lane-dense (C, B*T) store

    # bottleneck: Conv1x1(ReLU(BatchNorm1d(c))), once over the whole batch.
    hb = jnp.maximum(c * scale + shift, 0.0)
    out_ref[...] = jnp.dot(w1x1, hb, preferred_element_type=jnp.float32)

    # regularizer (all partial sums stay in vregs; no HBM re-read of d/c/x)
    mean_abs_d = _sum11(jnp.abs(d)) * (1.0 / N_HALF)
    mean_c = _sum11(c) * (1.0 / N_HALF)
    mean_x = (_sum11(xe) + _sum11(xo)) * (1.0 / N_FULL)
    # torch.dist(a, b, p=2) on scalars == |a - b|
    r_ref[...] = REGU_DETAILS * mean_abs_d + REGU_APPROX * jnp.abs(mean_c - mean_x)


_VMEM = pl.BlockSpec(memory_space=pltpu.MemorySpace.VMEM)

_fused_call = pl.pallas_call(
    _level_wasn_kernel,
    out_shape=(
        jax.ShapeDtypeStruct((C, BT), jnp.float32),   # bottleneck output, (C, B*T)
        jax.ShapeDtypeStruct((C, BT), jnp.float32),   # details d,         (C, B*T)
        jax.ShapeDtypeStruct((1, 1), jnp.float32),    # regularizer r
    ),
    in_specs=[_VMEM] * 12,
    out_specs=(_VMEM, _VMEM, _VMEM),
)


# ---------------- full LevelWASN forward (single jitted computation) ----------
@jax.jit
def level_wasn_forward(x, params):
    """x: (B, L, C) -> (out (B, T, C), r scalar, details (B, C, T))."""
    # Even/odd split + NCW layout + batch-fold in ONE transpose:
    # x[b, 2t+p, c] -> x_split[p, c, b*T + t]   (p=0 even, p=1 odd)
    x_split = jnp.transpose(x.reshape(B, T, 2, C), (2, 3, 0, 1)).reshape(2, C, BT)

    # Fold eval-mode BatchNorm1d into scale/shift once.
    inv_std = 1.0 / jnp.sqrt(params["bn_var"] + BN_EPS)
    scale = (params["bn_gamma"] * inv_std).reshape(C, 1)
    shift = (params["bn_beta"] - params["bn_mean"] * params["bn_gamma"] * inv_std).reshape(C, 1)

    # Stack conv taps for the im2col dots: (K, O, I) -> (O, K*I).
    def stack_taps(w):
        k, o, i = w.shape
        return jnp.transpose(w, (1, 0, 2)).reshape(o, k * i)

    out_flat, d_flat, r11 = _fused_call(
        x_split,
        stack_taps(params["P_w1"]), params["P_b1"].reshape(CH, 1),
        stack_taps(params["P_w2"]), params["P_b2"].reshape(C, 1),
        stack_taps(params["U_w1"]), params["U_b1"].reshape(CH, 1),
        stack_taps(params["U_w2"]), params["U_b2"].reshape(C, 1),
        scale, shift, params["conv1x1_w"])

    # Tiny presentation reshapes of the lane-dense kernel outputs.
    out = jnp.transpose(out_flat.reshape(C, B, T), (1, 2, 0))   # (B, T, C)
    details = jnp.transpose(d_flat.reshape(C, B, T), (1, 0, 2)) # (B, C, T)
    return out, r11[0, 0], details


# ---------------- pure-jnp reference (for correctness validation) -------------
def _reference_forward(x, params):
    x_even = x[:, ::2, :]
    x_odd = x[:, 1::2, :]
    xe = jnp.transpose(x_even, (0, 2, 1))
    xo = jnp.transpose(x_odd, (0, 2, 1))

    def branch(inp, w1, b1, w2, b2):
        xp = jnp.pad(inp, ((0, 0), (0, 0), (PAD, PAD)), mode="edge")
        h = jnp.zeros((B, CH, T1), jnp.float32)
        for k in range(K1):
            h = h + jnp.einsum("oc,bct->bot", w1[k], xp[:, :, k * DIL:k * DIL + T1])
        h = h + b1.reshape(1, CH, 1)
        h = jnp.where(h > 0, h, 0.01 * h)
        y = jnp.zeros((B, C, T), jnp.float32)
        for k in range(K2):
            y = y + jnp.einsum("oc,bct->bot", w2[k], h[:, :, k:k + T])
        y = y + b2.reshape(1, C, 1)
        return jnp.tanh(y)

    d = xo - branch(xe, params["P_w1"], params["P_b1"], params["P_w2"], params["P_b2"])
    c = xe + branch(d, params["U_w1"], params["U_b1"], params["U_w2"], params["U_b2"])

    r = (REGU_DETAILS * jnp.mean(jnp.abs(d)) +
         REGU_APPROX * jnp.abs(jnp.mean(c) - jnp.mean(x)))

    inv_std = 1.0 / jnp.sqrt(params["bn_var"] + BN_EPS)
    xn = ((c - params["bn_mean"].reshape(1, C, 1)) * inv_std.reshape(1, C, 1)
          * params["bn_gamma"].reshape(1, C, 1) + params["bn_beta"].reshape(1, C, 1))
    out = jnp.einsum("oc,bct->bot", params["conv1x1_w"], jnp.maximum(xn, 0.0))
    return jnp.transpose(out, (0, 2, 1)), r, d


# ---------------- deterministic parameter init & demo -------------------------
def make_params(key):
    ks = jax.random.split(key, 10)
    params = {
        # Conv weights stored as (K, out_ch, in_ch).
        "P_w1": 0.1 * jax.random.normal(ks[0], (K1, CH, C), jnp.float32),
        "P_b1": 0.1 * jax.random.normal(ks[1], (CH,), jnp.float32),
        "P_w2": 0.1 * jax.random.normal(ks[2], (K2, C, CH), jnp.float32),
        "P_b2": 0.1 * jax.random.normal(ks[3], (C,), jnp.float32),
        "U_w1": 0.1 * jax.random.normal(ks[4], (K1, CH, C), jnp.float32),
        "U_b1": 0.1 * jax.random.normal(ks[5], (CH,), jnp.float32),
        "U_w2": 0.1 * jax.random.normal(ks[6], (K2, C, CH), jnp.float32),
        "U_b2": 0.1 * jax.random.normal(ks[7], (C,), jnp.float32),
        # BatchNorm1d default init (eval mode, running stats).
        "bn_gamma": jnp.ones((C,), jnp.float32),
        "bn_beta": jnp.zeros((C,), jnp.float32),
        "bn_mean": jnp.zeros((C,), jnp.float32),
        "bn_var": jnp.ones((C,), jnp.float32),
        # Conv1d(C, C, kernel_size=1, bias=False) -> (C, C) matrix.
        "conv1x1_w": 0.1 * jax.random.normal(ks[8], (C, C), jnp.float32),
    }
    return params, ks[9]


if __name__ == "__main__":
    key = jax.random.PRNGKey(0)
    params, xkey = make_params(key)
    x = jax.random.normal(xkey, (B, L, C), jnp.float32)

    out, r, details = level_wasn_forward(x, params)
    jax.block_until_ready((out, r, details))

    assert out.shape == (B, T, C)
    assert r.shape == ()
    assert details.shape == (B, C, T)
    assert bool(jnp.all(jnp.isfinite(out))) and bool(jnp.isfinite(r))

    # correctness vs a pure-jnp reference of the same forward
    out_ref_v, r_ref_v, d_ref_v = _reference_forward(x, params)
    assert jnp.allclose(out, out_ref_v, atol=1e-3, rtol=1e-3)
    assert jnp.allclose(details, d_ref_v, atol=1e-3, rtol=1e-3)
    assert jnp.allclose(r, r_ref_v, atol=1e-3, rtol=1e-3)

    print("KERNEL_OK")
</pallas_src>

<mosaic_0001>
module attributes {stable_mosaic.version = 11 : i64} {
  func.func @_level_wasn_kernel(%arg0: memref<2x4x16xf32, #tpu.memory_space<vmem>>, %arg1: memref<8x12xf32, #tpu.memory_space<vmem>>, %arg2: memref<8x1xf32, #tpu.memory_space<vmem>>, %arg3: memref<4x24xf32, #tpu.memory_space<vmem>>, %arg4: memref<4x1xf32, #tpu.memory_space<vmem>>, %arg5: memref<8x12xf32, #tpu.memory_space<vmem>>, %arg6: memref<8x1xf32, #tpu.memory_space<vmem>>, %arg7: memref<4x24xf32, #tpu.memory_space<vmem>>, %arg8: memref<4x1xf32, #tpu.memory_space<vmem>>, %arg9: memref<4x1xf32, #tpu.memory_space<vmem>>, %arg10: memref<4x1xf32, #tpu.memory_space<vmem>>, %arg11: memref<4x4xf32, #tpu.memory_space<vmem>>, %arg12: memref<4x16xf32, #tpu.memory_space<vmem>>, %arg13: memref<4x16xf32, #tpu.memory_space<vmem>>, %arg14: memref<1x1xf32, #tpu.memory_space<vmem>>) attributes {dimension_semantics = [], scalar_prefetch = 0 : i64, scratch_operands = 0 : i64, tpu.core_type = #tpu.core_type<tc>} {
    %c0 = arith.constant 0 : index
    %c0_0 = arith.constant 0 : index
    %c0_1 = arith.constant 0 : index
    %0 = vector.load %arg0[%c0, %c0_0, %c0_1] : memref<2x4x16xf32, #tpu.memory_space<vmem>>, vector<1x4x16xf32>
    %1 = vector.shape_cast %0 : vector<1x4x16xf32> to vector<4x16xf32>
    %c1 = arith.constant 1 : index
    %c0_2 = arith.constant 0 : index
    %c0_3 = arith.constant 0 : index
    %2 = vector.load %arg0[%c1, %c0_2, %c0_3] : memref<2x4x16xf32, #tpu.memory_space<vmem>>, vector<1x4x16xf32>
    %3 = vector.shape_cast %2 : vector<1x4x16xf32> to vector<4x16xf32>
    %c0_4 = arith.constant 0 : index
    %c0_5 = arith.constant 0 : index
    %4 = vector.load %arg1[%c0_4, %c0_5] : memref<8x12xf32, #tpu.memory_space<vmem>>, vector<8x12xf32>
    %c0_6 = arith.constant 0 : index
    %c0_7 = arith.constant 0 : index
    %5 = vector.load %arg2[%c0_6, %c0_7] : memref<8x1xf32, #tpu.memory_space<vmem>>, vector<8x1xf32>
    %c0_8 = arith.constant 0 : index
    %c0_9 = arith.constant 0 : index
    %6 = vector.load %arg3[%c0_8, %c0_9] : memref<4x24xf32, #tpu.memory_space<vmem>>, vector<4x24xf32>
    %c0_10 = arith.constant 0 : index
    %c0_11 = arith.constant 0 : index
    %7 = vector.load %arg4[%c0_10, %c0_11] : memref<4x1xf32, #tpu.memory_space<vmem>>, vector<4x1xf32>
    %c0_12 = arith.constant 0 : index
    %c0_13 = arith.constant 0 : index
    %8 = vector.load %arg5[%c0_12, %c0_13] : memref<8x12xf32, #tpu.memory_space<vmem>>, vector<8x12xf32>
    %c0_14 = arith.constant 0 : index
    %c0_15 = arith.constant 0 : index
    %9 = vector.load %arg6[%c0_14, %c0_15] : memref<8x1xf32, #tpu.memory_space<vmem>>, vector<8x1xf32>
    %c0_16 = arith.constant 0 : index
    %c0_17 = arith.constant 0 : index
    %10 = vector.load %arg7[%c0_16, %c0_17] : memref<4x24xf32, #tpu.memory_space<vmem>>, vector<4x24xf32>
    %c0_18 = arith.constant 0 : index
    %c0_19 = arith.constant 0 : index
    %11 = vector.load %arg8[%c0_18, %c0_19] : memref<4x1xf32, #tpu.memory_space<vmem>>, vector<4x1xf32>
    %c0_20 = arith.constant 0 : index
    %c0_21 = arith.constant 0 : index
    %12 = vector.load %arg9[%c0_20, %c0_21] : memref<4x1xf32, #tpu.memory_space<vmem>>, vector<4x1xf32>
    %c0_22 = arith.constant 0 : index
    %c0_23 = arith.constant 0 : index
    %13 = vector.load %arg10[%c0_22, %c0_23] : memref<4x1xf32, #tpu.memory_space<vmem>>, vector<4x1xf32>
    %c0_24 = arith.constant 0 : index
    %c0_25 = arith.constant 0 : index
    %14 = vector.load %arg11[%c0_24, %c0_25] : memref<4x4xf32, #tpu.memory_space<vmem>>, vector<4x4xf32>
    %15 = vector.extract_strided_slice %1 {offsets = [0, 0], sizes = [4, 8], strides = [1, 1]} : vector<4x16xf32> to vector<4x8xf32>
    %16 = vector.extract_strided_slice %15 {offsets = [0, 0], sizes = [4, 1], strides = [1, 1]} : vector<4x8xf32> to vector<4x1xf32>
    %17 = vector.shape_cast %16 : vector<4x1xf32> to vector<4x1xf32>
    %18 = vector.broadcast %17 : vector<4x1xf32> to vector<4x2xf32>
    %19 = vector.extract_strided_slice %15 {offsets = [0, 7], sizes = [4, 1], strides = [1, 1]} : vector<4x8xf32> to vector<4x1xf32>
    %20 = vector.shape_cast %19 : vector<4x1xf32> to vector<4x1xf32>
    %21 = vector.broadcast %20 : vector<4x1xf32> to vector<4x2xf32>
    %22 = tpu.concatenate %18, %15, %21 in 1 : vector<4x2xf32>, vector<4x8xf32>, vector<4x2xf32> -> vector<4x12xf32>
    %23 = vector.extract_strided_slice %1 {offsets = [0, 8], sizes = [4, 8], strides = [1, 1]} : vector<4x16xf32> to vector<4x8xf32>
    %24 = vector.extract_strided_slice %23 {offsets = [0, 0], sizes = [4, 1], strides = [1, 1]} : vector<4x8xf32> to vector<4x1xf32>
    %25 = vector.shape_cast %24 : vector<4x1xf32> to vector<4x1xf32>
    %26 = vector.broadcast %25 : vector<4x1xf32> to vector<4x2xf32>
    %27 = vector.extract_strided_slice %23 {offsets = [0, 7], sizes = [4, 1], strides = [1, 1]} : vector<4x8xf32> to vector<4x1xf32>
    %28 = vector.shape_cast %27 : vector<4x1xf32> to vector<4x1xf32>
    %29 = vector.broadcast %28 : vector<4x1xf32> to vector<4x2xf32>
    %30 = tpu.concatenate %26, %23, %29 in 1 : vector<4x2xf32>, vector<4x8xf32>, vector<4x2xf32> -> vector<4x12xf32>
    %31 = vector.extract_strided_slice %22 {offsets = [0, 0], sizes = [4, 10], strides = [1, 1]} : vector<4x12xf32> to vector<4x10xf32>
    %32 = vector.extract_strided_slice %30 {offsets = [0, 0], sizes = [4, 10], strides = [1, 1]} : vector<4x12xf32> to vector<4x10xf32>
    %33 = tpu.concatenate %31, %32 in 1 : vector<4x10xf32>, vector<4x10xf32> -> vector<4x20xf32>
    %34 = vector.extract_strided_slice %22 {offsets = [0, 1], sizes = [4, 10], strides = [1, 1]} : vector<4x12xf32> to vector<4x10xf32>
    %35 = vector.extract_strided_slice %30 {offsets = [0, 1], sizes = [4, 10], strides = [1, 1]} : vector<4x12xf32> to vector<4x10xf32>
    %36 = tpu.concatenate %34, %35 in 1 : vector<4x10xf32>, vector<4x10xf32> -> vector<4x20xf32>
    %37 = vector.extract_strided_slice %22 {offsets = [0, 2], sizes = [4, 10], strides = [1, 1]} : vector<4x12xf32> to vector<4x10xf32>
    %38 = vector.extract_strided_slice %30 {offsets = [0, 2], sizes = [4, 10], strides = [1, 1]} : vector<4x12xf32> to vector<4x10xf32>
    %39 = tpu.concatenate %37, %38 in 1 : vector<4x10xf32>, vector<4x10xf32> -> vector<4x20xf32>
    %40 = tpu.concatenate %33, %36, %39 in 0 : vector<4x20xf32>, vector<4x20xf32>, vector<4x20xf32> -> vector<12x20xf32>
    %cst = arith.constant dense<0.000000e+00> : vector<8x20xf32>
    %41 = tpu.matmul %4, %40, %cst {dimension_numbers = #tpu.dot_dimension_numbers<[1], [0], [0], [1], [0, 0, 1, 1], [], []>} : vector<8x12xf32>, vector<12x20xf32>, vector<8x20xf32> -> vector<8x20xf32>
    %42 = vector.broadcast %5 : vector<8x1xf32> to vector<8x20xf32>
    %43 = arith.addf %41, %42 : vector<8x20xf32>
    %cst_26 = arith.constant 0.000000e+00 : f32
    %44 = vector.broadcast %cst_26 : f32 to vector<8x20xf32>
    %45 = arith.cmpf ogt, %43, %44 : vector<8x20xf32>
    %cst_27 = arith.constant 0.00999999977 : f32
    %46 = vector.broadcast %cst_27 : f32 to vector<8x20xf32>
    %47 = arith.mulf %46, %43 : vector<8x20xf32>
    %48 = arith.select %45, %43, %47 : vector<8x20xi1>, vector<8x20xf32>
    %49 = vector.extract_strided_slice %48 {offsets = [0, 0], sizes = [8, 8], strides = [1, 1]} : vector<8x20xf32> to vector<8x8xf32>
    %50 = vector.extract_strided_slice %48 {offsets = [0, 10], sizes = [8, 8], strides = [1, 1]} : vector<8x20xf32> to vector<8x8xf32>
    %51 = tpu.concatenate %49, %50 in 1 : vector<8x8xf32>, vector<8x8xf32> -> vector<8x16xf32>
    %52 = vector.extract_strided_slice %48 {offsets = [0, 1], sizes = [8, 8], strides = [1, 1]} : vector<8x20xf32> to vector<8x8xf32>
    %53 = vector.extract_strided_slice %48 {offsets = [0, 11], sizes = [8, 8], strides = [1, 1]} : vector<8x20xf32> to vector<8x8xf32>
    %54 = tpu.concatenate %52, %53 in 1 : vector<8x8xf32>, vector<8x8xf32> -> vector<8x16xf32>
    %55 = vector.extract_strided_slice %48 {offsets = [0, 2], sizes = [8, 8], strides = [1, 1]} : vector<8x20xf32> to vector<8x8xf32>
    %56 = vector.extract_strided_slice %48 {offsets = [0, 12], sizes = [8, 8], strides = [1, 1]} : vector<8x20xf32> to vector<8x8xf32>
    %57 = tpu.concatenate %55, %56 in 1 : vector<8x8xf32>, vector<8x8xf32> -> vector<8x16xf32>
    %58 = tpu.concatenate %51, %54, %57 in 0 : vector<8x16xf32>, vector<8x16xf32>, vector<8x16xf32> -> vector<24x16xf32>
    %cst_28 = arith.constant dense<0.000000e+00> : vector<4x16xf32>
    %59 = tpu.matmul %6, %58, %cst_28 {dimension_numbers = #tpu.dot_dimension_numbers<[1], [0], [0], [1], [0, 0, 1, 1], [], []>} : vector<4x24xf32>, vector<24x16xf32>, vector<4x16xf32> -> vector<4x16xf32>
    %60 = vector.broadcast %7 : vector<4x1xf32> to vector<4x16xf32>
    %61 = arith.addf %59, %60 : vector<4x16xf32>
    %62 = math.tanh %61 : vector<4x16xf32>
    %63 = arith.subf %3, %62 : vector<4x16xf32>
    %64 = vector.extract_strided_slice %63 {offsets = [0, 0], sizes = [4, 8], strides = [1, 1]} : vector<4x16xf32> to vector<4x8xf32>
    %65 = vector.extract_strided_slice %64 {offsets = [0, 0], sizes = [4, 1], strides = [1, 1]} : vector<4x8xf32> to vector<4x1xf32>
    %66 = vector.shape_cast %65 : vector<4x1xf32> to vector<4x1xf32>
    %67 = vector.broadcast %66 : vector<4x1xf32> to vector<4x2xf32>
    %68 = vector.extract_strided_slice %64 {offsets = [0, 7], sizes = [4, 1], strides = [1, 1]} : vector<4x8xf32> to vector<4x1xf32>
    %69 = vector.shape_cast %68 : vector<4x1xf32> to vector<4x1xf32>
    %70 = vector.broadcast %69 : vector<4x1xf32> to vector<4x2xf32>
    %71 = tpu.concatenate %67, %64, %70 in 1 : vector<4x2xf32>, vector<4x8xf32>, vector<4x2xf32> -> vector<4x12xf32>
    %72 = vector.extract_strided_slice %63 {offsets = [0, 8], sizes = [4, 8], strides = [1, 1]} : vector<4x16xf32> to vector<4x8xf32>
    %73 = vector.extract_strided_slice %72 {offsets = [0, 0], sizes = [4, 1], strides = [1, 1]} : vector<4x8xf32> to vector<4x1xf32>
    %74 = vector.shape_cast %73 : vector<4x1xf32> to vector<4x1xf32>
    %75 = vector.broadcast %74 : vector<4x1xf32> to vector<4x2xf32>
    %76 = vector.extract_strided_slice %72 {offsets = [0, 7], sizes = [4, 1], strides = [1, 1]} : vector<4x8xf32> to vector<4x1xf32>
    %77 = vector.shape_cast %76 : vector<4x1xf32> to vector<4x1xf32>
    %78 = vector.broadcast %77 : vector<4x1xf32> to vector<4x2xf32>
    %79 = tpu.concatenate %75, %72, %78 in 1 : vector<4x2xf32>, vector<4x8xf32>, vector<4x2xf32> -> vector<4x12xf32>
    %80 = vector.extract_strided_slice %71 {offsets = [0, 0], sizes = [4, 10], strides = [1, 1]} : vector<4x12xf32> to vector<4x10xf32>
    %81 = vector.extract_strided_slice %79 {offsets = [0, 0], sizes = [4, 10], strides = [1, 1]} : vector<4x12xf32> to vector<4x10xf32>
    %82 = tpu.concatenate %80, %81 in 1 : vector<4x10xf32>, vector<4x10xf32> -> vector<4x20xf32>
    %83 = vector.extract_strided_slice %71 {offsets = [0, 1], sizes = [4, 10], strides = [1, 1]} : vector<4x12xf32> to vector<4x10xf32>
    %84 = vector.extract_strided_slice %79 {offsets = [0, 1], sizes = [4, 10], strides = [1, 1]} : vector<4x12xf32> to vector<4x10xf32>
    %85 = tpu.concatenate %83, %84 in 1 : vector<4x10xf32>, vector<4x10xf32> -> vector<4x20xf32>
    %86 = vector.extract_strided_slice %71 {offsets = [0, 2], sizes = [4, 10], strides = [1, 1]} : vector<4x12xf32> to vector<4x10xf32>
    %87 = vector.extract_strided_slice %79 {offsets = [0, 2], sizes = [4, 10], strides = [1, 1]} : vector<4x12xf32> to vector<4x10xf32>
    %88 = tpu.concatenate %86, %87 in 1 : vector<4x10xf32>, vector<4x10xf32> -> vector<4x20xf32>
    %89 = tpu.concatenate %82, %85, %88 in 0 : vector<4x20xf32>, vector<4x20xf32>, vector<4x20xf32> -> vector<12x20xf32>
    %cst_29 = arith.constant dense<0.000000e+00> : vector<8x20xf32>
    %90 = tpu.matmul %8, %89, %cst_29 {dimension_numbers = #tpu.dot_dimension_numbers<[1], [0], [0], [1], [0, 0, 1, 1], [], []>} : vector<8x12xf32>, vector<12x20xf32>, vector<8x20xf32> -> vector<8x20xf32>
    %91 = vector.broadcast %9 : vector<8x1xf32> to vector<8x20xf32>
    %92 = arith.addf %90, %91 : vector<8x20xf32>
    %cst_30 = arith.constant 0.000000e+00 : f32
    %93 = vector.broadcast %cst_30 : f32 to vector<8x20xf32>
    %94 = arith.cmpf ogt, %92, %93 : vector<8x20xf32>
    %cst_31 = arith.constant 0.00999999977 : f32
    %95 = vector.broadcast %cst_31 : f32 to vector<8x20xf32>
    %96 = arith.mulf %95, %92 : vector<8x20xf32>
    %97 = arith.select %94, %92, %96 : vector<8x20xi1>, vector<8x20xf32>
    %98 = vector.extract_strided_slice %97 {offsets = [0, 0], sizes = [8, 8], strides = [1, 1]} : vector<8x20xf32> to vector<8x8xf32>
    %99 = vector.extract_strided_slice %97 {offsets = [0, 10], sizes = [8, 8], strides = [1, 1]} : vector<8x20xf32> to vector<8x8xf32>
    %100 = tpu.concatenate %98, %99 in 1 : vector<8x8xf32>, vector<8x8xf32> -> vector<8x16xf32>
    %101 = vector.extract_strided_slice %97 {offsets = [0, 1], sizes = [8, 8], strides = [1, 1]} : vector<8x20xf32> to vector<8x8xf32>
    %102 = vector.extract_strided_slice %97 {offsets = [0, 11], sizes = [8, 8], strides = [1, 1]} : vector<8x20xf32> to vector<8x8xf32>
    %103 = tpu.concatenate %101, %102 in 1 : vector<8x8xf32>, vector<8x8xf32> -> vector<8x16xf32>
    %104 = vector.extract_strided_slice %97 {offsets = [0, 2], sizes = [8, 8], strides = [1, 1]} : vector<8x20xf32> to vector<8x8xf32>
    %105 = vector.extract_strided_slice %97 {offsets = [0, 12], sizes = [8, 8], strides = [1, 1]} : vector<8x20xf32> to vector<8x8xf32>
    %106 = tpu.concatenate %104, %105 in 1 : vector<8x8xf32>, vector<8x8xf32> -> vector<8x16xf32>
    %107 = tpu.concatenate %100, %103, %106 in 0 : vector<8x16xf32>, vector<8x16xf32>, vector<8x16xf32> -> vector<24x16xf32>
    %cst_32 = arith.constant dense<0.000000e+00> : vector<4x16xf32>
    %108 = tpu.matmul %10, %107, %cst_32 {dimension_numbers = #tpu.dot_dimension_numbers<[1], [0], [0], [1], [0, 0, 1, 1], [], []>} : vector<4x24xf32>, vector<24x16xf32>, vector<4x16xf32> -> vector<4x16xf32>
    %109 = vector.broadcast %11 : vector<4x1xf32> to vector<4x16xf32>
    %110 = arith.addf %108, %109 : vector<4x16xf32>
    %111 = math.tanh %110 : vector<4x16xf32>
    %112 = arith.addf %1, %111 : vector<4x16xf32>
    %c0_33 = arith.constant 0 : index
    %c0_34 = arith.constant 0 : index
    %113 = vector.load %arg13[%c0_33, %c0_34] : memref<4x16xf32, #tpu.memory_space<vmem>>, vector<4x16xf32>
    tpu.vector_store %arg13[%c0_33, %c0_34], %63 {strides = array<i32>} : memref<4x16xf32, #tpu.memory_space<vmem>>, vector<4x16xf32>,
    %114 = vector.broadcast %12 : vector<4x1xf32> to vector<4x16xf32>
    %115 = arith.mulf %112, %114 : vector<4x16xf32>
    %116 = vector.broadcast %13 : vector<4x1xf32> to vector<4x16xf32>
    %117 = arith.addf %115, %116 : vector<4x16xf32>
    %cst_35 = arith.constant 0.000000e+00 : f32
    %118 = vector.broadcast %cst_35 : f32 to vector<4x16xf32>
    %119 = arith.maximumf %117, %118 : vector<4x16xf32>
    %cst_36 = arith.constant dense<0.000000e+00> : vector<4x16xf32>
    %120 = tpu.matmul %14, %119, %cst_36 {dimension_numbers = #tpu.dot_dimension_numbers<[1], [0], [0], [1], [0, 0, 1, 1], [], []>} : vector<4x4xf32>, vector<4x16xf32>, vector<4x16xf32> -> vector<4x16xf32>
    %c0_37 = arith.constant 0 : index
    %c0_38 = arith.constant 0 : index
    %121 = vector.load %arg12[%c0_37, %c0_38] : memref<4x16xf32, #tpu.memory_space<vmem>>, vector<4x16xf32>
    tpu.vector_store %arg12[%c0_37, %c0_38], %120 {strides = array<i32>} : memref<4x16xf32, #tpu.memory_space<vmem>>, vector<4x16xf32>,
    %122 = math.absf %63 : vector<4x16xf32>
    %cst_39 = arith.constant dense<0.000000e+00> : vector<4xf32>
    %123 = vector.multi_reduction <add>, %122, %cst_39 [1] : vector<4x16xf32> to vector<4xf32>
    %124 = vector.shape_cast %123 : vector<4xf32> to vector<4x1xf32>
    %cst_40 = arith.constant dense<0.000000e+00> : vector<1xf32>
    %125 = vector.multi_reduction <add>, %124, %cst_40 [0] : vector<4x1xf32> to vector<1xf32>
    %126 = vector.shape_cast %125 : vector<1xf32> to vector<1x1xf32>
    %cst_41 = arith.constant 1.562500e-02 : f32
    %127 = vector.broadcast %cst_41 : f32 to vector<1x1xf32>
    %128 = arith.mulf %126, %127 : vector<1x1xf32>
    %cst_42 = arith.constant dense<0.000000e+00> : vector<4xf32>
    %129 = vector.multi_reduction <add>, %112, %cst_42 [1] : vector<4x16xf32> to vector<4xf32>
    %130 = vector.shape_cast %129 : vector<4xf32> to vector<4x1xf32>
    %cst_43 = arith.constant dense<0.000000e+00> : vector<1xf32>
    %131 = vector.multi_reduction <add>, %130, %cst_43 [0] : vector<4x1xf32> to vector<1xf32>
    %132 = vector.shape_cast %131 : vector<1xf32> to vector<1x1xf32>
    %cst_44 = arith.constant 1.562500e-02 : f32
    %133 = vector.broadcast %cst_44 : f32 to vector<1x1xf32>
    %134 = arith.mulf %132, %133 : vector<1x1xf32>
    %cst_45 = arith.constant dense<0.000000e+00> : vector<4xf32>
    %135 = vector.multi_reduction <add>, %1, %cst_45 [1] : vector<4x16xf32> to vector<4xf32>
    %136 = vector.shape_cast %135 : vector<4xf32> to vector<4x1xf32>
    %cst_46 = arith.constant dense<0.000000e+00> : vector<1xf32>
    %137 = vector.multi_reduction <add>, %136, %cst_46 [0] : vector<4x1xf32> to vector<1xf32>
    %138 = vector.shape_cast %137 : vector<1xf32> to vector<1x1xf32>
    %cst_47 = arith.constant dense<0.000000e+00> : vector<4xf32>
    %139 = vector.multi_reduction <add>, %3, %cst_47 [1] : vector<4x16xf32> to vector<4xf32>
    %140 = vector.shape_cast %139 : vector<4xf32> to vector<4x1xf32>
    %cst_48 = arith.constant dense<0.000000e+00> : vector<1xf32>
    %141 = vector.multi_reduction <add>, %140, %cst_48 [0] : vector<4x1xf32> to vector<1xf32>
    %142 = vector.shape_cast %141 : vector<1xf32> to vector<1x1xf32>
    %143 = arith.addf %138, %142 : vector<1x1xf32>
    %cst_49 = arith.constant 7.812500e-03 : f32
    %144 = vector.broadcast %cst_49 : f32 to vector<1x1xf32>
    %145 = arith.mulf %143, %144 : vector<1x1xf32>
    %cst_50 = arith.constant 1.000000e-01 : f32
    %146 = vector.broadcast %cst_50 : f32 to vector<1x1xf32>
    %147 = arith.mulf %146, %128 : vector<1x1xf32>
    %148 = arith.subf %134, %145 : vector<1x1xf32>
    %149 = math.absf %148 : vector<1x1xf32>
    %cst_51 = arith.constant 1.000000e-01 : f32
    %150 = vector.broadcast %cst_51 : f32 to vector<1x1xf32>
    %151 = arith.mulf %150, %149 : vector<1x1xf32>
    %152 = arith.addf %147, %151 : vector<1x1xf32>
    %c0_52 = arith.constant 0 : index
    %c0_53 = arith.constant 0 : index
    %153 = vector.load %arg14[%c0_52, %c0_53] : memref<1x1xf32, #tpu.memory_space<vmem>>, vector<1x1xf32>
    tpu.vector_store %arg14[%c0_52, %c0_53], %152 {strides = array<i32>} : memref<1x1xf32, #tpu.memory_space<vmem>>, vector<1x1xf32>,
    return
  }
}

</mosaic_0001>

<bundles_post_ra>
// kernel: level_wasn_forward.1
= control target key start
LH: loop header
LB: loop body
LE: loop exit
PB: predicated region body
PF: predicated region fallthrough
CT: control target
= control target key end

     0   :  { %v510_v1 = vmov 8   ;;  %v511_v2 = vmov 0   ;;  %s727_s0 = inlined_call_operand.vmem [shape: f32[2,4,16], index: 0, kind: input, shape index: {}]   ;;  %s728_s1 = inlined_call_operand.vmem [shape: f32[8,12], index: 1, kind: input, shape index: {}]   ;;  %s729_s2 = inlined_call_operand.vmem [shape: f32[8,1], index: 2, kind: input, shape index: {}]   ;;  %s730_s3 = inlined_call_operand.vmem [shape: f32[4,24], index: 3, kind: input, shape index: {}]   ;;  %s731_s4 = inlined_call_operand.vmem [shape: f32[4,1], index: 4, kind: input, shape index: {}]   ;;  %s732_s5 = inlined_call_operand.vmem [shape: f32[8,12], index: 5, kind: input, shape index: {}]   ;;  %s733_s6 = inlined_call_operand.vmem [shape: f32[8,1], index: 6, kind: input, shape index: {}]   ;;  %s734_s7 = inlined_call_operand.vmem [shape: f32[4,24], index: 7, kind: input, shape index: {}]   ;;  %s735_s8 = inlined_call_operand.vmem [shape: f32[4,1], index: 8, kind: input, shape index: {}]   ;;  %s736_s9 = inlined_call_operand.vmem [shape: f32[4,1], index: 9, kind: input, shape index: {}]   ;;  %s737_s10 = inlined_call_operand.vmem [shape: f32[4,1], index: 10, kind: input, shape index: {}]   ;;  %s738_s11 = inlined_call_operand.vmem [shape: f32[4,4], index: 11, kind: input, shape index: {}]   ;;  %s739_s12 = inlined_call_operand.vmem [shape: f32[4,16], index: 12, kind: output, shape index: {0}]   ;;  %s740_s13 = inlined_call_operand.vmem [shape: f32[4,16], index: 13, kind: output, shape index: {1}]   ;;  %s741_s14 = inlined_call_operand.hbm [shape: f32[1,1], index: 14, kind: output, shape index: {2}]  }
   0x1   :  { %v602_v0 = vld [vmem:[%s727_s0] sm:$0xf]  ;;  %470 = vset.pattern.permute.xlu1 %v510_v1  ;;  %469 = vset.pattern.permute.xlu0 %v511_v2 }
   0x2   :  { %20 = vsyncpa [#allocation3], 0  ;;  %76 = vperm.xlu1 %470, %v602_v0   ;;  %61 = vperm.xlu0 %469, %v602_v0   ;;  %v512_v3 = vmov 7   ;;  %s513_s15 = smov 122   ;;  %s514_s16 = smov 2   ;;  %v515_v4 = vmov 15  }
   0x3   :  { %471 = vset.pattern.permute.xlu2 %v512_v3  ;;  %vm71_vm0 = vcmask 15360   ;;  %vm73_vm1 = vcmask 80896   ;;  %s516_s17 = smov 9   ;;  %s517_s18 = smov 126   ;;  %v49_v15 = vld [vmem:[%s729_s2] sm:$0xff]  ;;  %vm111_vm2 = vcmask 1043456  }
   0x4   :  { %65 = vperm.xlu2 %471, %v602_v0   ;;  %s518_s19 = smov 127   ;;  %s519_s20 = smov 10   ;;  %v48_v26 = vld [vmem:[%s728_s1] sm:$0xff]  ;;  %vm118_vm3 = vcmask 97280   ;;  %vm152_vm5 = vcmask 64512   ;;  %vm170_vm6 = vcmask 195584  }
   0x5   :  { %s520_s21 = smov 8   ;;  %s521_s25 = smov 124   ;;  %v51_v32 = vld [vmem:[%s731_s4] sm:$0xf]  ;;  %v446_v44 = vld [vmem:[%s727_s0 + $0x4] sm:$0xf] }
   0x6   :  { %s522_s26 = smov 125   ;;  %v50_v39 = vld [vmem:[%s730_s3] sm:$0xf]  ;;  %vm327_vm7 = vcmask 125952   ;;  %vm342_vm9 = vcmask 31744   ;;  %s523_s23 = smov [#allocation2]  }
   0x7   :  { %v53_v57 = vld [vmem:[%s733_s6] sm:$0xff]  ;;  %s431_s24 = sshll.u32 %s523_s23, 4  ;;  %vm420_vm10 = vcmask 0   ;;  %s432_s24 = int_to_ptr.vmem [resolvable:$true] %s431_s24 }
   0xa   :  { %83 = vrot.lane.b32.xlu1 %v602_v0, %s513_s15  ;;  %68 = vrot.lane.b32.xlu0 %v602_v0, %s514_s16 }
   0xb   :  { %474 = vset.pattern.permute.xlu1 %v511_v2  ;;  %476 = vset.pattern.permute.xlu0 %v512_v3 }
   0xc   :  { %472 = vset.pattern.permute.xlu2 %v515_v4 }
   0xd   :  { %80 = vperm.xlu2 %472, %v602_v0  }
  0x15   :  { %473 = vset.pattern.permute.xlu2 %v511_v2 }
  0x5e   :  { %v66_v5 = vpop.permute.xlu2 %65 }
  0x67   :  { %v81_v8 = vpop.permute.xlu2 %80 }
  0x74   :  { %v77_v6 = vpop.permute.xlu1 %76  ;;  %v62_v7 = vpop.permute.xlu0 %61 }
  0x7c   :  { %v84_v9 = vpop.permute.xlu1 %83  ;;  %v69_v10 = vpop.permute.xlu0 %68 }
  0x7d   :  { %v86_v11 = vsel %vm71_vm0, %v77_v6, %v84_v9  ;;  %v72_v12 = vsel %vm71_vm0, %v62_v7, %v69_v10 }
  0x7e   :  { %v87_v13 = vsel %vm73_vm1, %v86_v11, %v81_v8  ;;  %v74_v14 = vsel %vm73_vm1, %v72_v12, %v66_v5  ;;  %v56_v11 = vld [vmem:[%s736_s9] sm:$0xf]  ;;  %v403_v12 = vsel %vm327_vm7, %v446_v44, 0.0 }
  0x7f   :  { %97 = vrot.lane.b32.xlu1 %v87_v13, %s516_s17  ;;  %101 = vrot.lane.b32.xlu2 %v74_v14, %s517_s18 }
  0x80   :  { %94 = vrot.lane.b32.xlu0 %v74_v14, %s518_s19 }
  0x87   :  { %89 = vrot.lane.b32.xlu1 %v87_v13, %s519_s20  ;;  %115 = vperm.xlu2 %473, %v49_v15   ;;  %v55_v15 = vld [vmem:[%s735_s8] sm:$0xf] }
  0x88   :  { %104 = vrot.lane.b32.xlu0 %v87_v13, %s520_s21 }
  0xd9   :  { %v102_v21 = vpop.permute.xlu2 %101 }
  0xe1   :  { %v116_v27 = vpop.permute.xlu2 %115 }
  0xf1   :  { %v98_v16 = vpop.permute.xlu1 %97 }
  0xf2   :  { %v95_v17 = vpop.permute.xlu0 %94 }
  0xf3   :  { %v100_v18 = vsel %vm73_vm1, %v95_v17, %v98_v16  ;;  %v57_v16 = vld [vmem:[%s737_s10] sm:$0xf] }
  0xf4   :  { %v109_v19 = vrot.slane %v100_v18, 4 }
  0xf9   :  { %v90_v20 = vpop.permute.xlu1 %89 }
  0xfa   :  { %v92_v22 = vsel %vm73_vm1, %v74_v14, %v90_v20  ;;  %v105_v23 = vpop.permute.xlu0 %104 }
  0xfb   :  { %v107_v24 = vsel %vm73_vm1, %v102_v21, %v105_v23  ;;  %v112_v25 = vsel %vm111_vm2, %v92_v22, %v109_v19  ;;  %v54_v23 = vld [vmem:[%s734_s7] sm:$0xf] }
  0xfc   :  { %447 = vmatpush.msk.msra.mxu0 %vm111_vm2, %v107_v24 }
  0xfe   :  { %140 = vmatpush.msra.mxu0 %v112_v25  ;;  %v393_v25 = vsel %vm327_vm7, %v602_v0, 0.0 }
  0xff   :  { %448 = vmatmul.msk.f32.vlgmr.msra.gmra.mxu0 %vm118_vm3, %v48_v26 }
 0x17c   :  { %v142_v28 = vpop.f32.mrf.mxu0 }
 0x17d   :  { %v143_v29 = vadd.f32 %v142_v28, %v116_v27 }
 0x17f   :  { %vm145_vm4 = vcmp.gt.f32.partialorder %v143_v29, 0.0  ;;  %v146_v30 = vmul.f32 0.01, %v143_v29 }
 0x181   :  { %v147_v31 = vsel %vm145_vm4, %v143_v29, %v146_v30 }
 0x182   :  { %154 = vrot.lane.b32.xlu2 %v147_v31, %s518_s19  ;;  %161 = vrot.lane.b32.xlu1 %v147_v31, %s521_s25 }
 0x183   :  { %149 = vrot.lane.b32.xlu0 %v147_v31, %s517_s18 }
 0x18a   :  { %167 = vperm.xlu1 %474, %v51_v32  }
 0x18b   :  { %157 = vrot.lane.b32.xlu0 %v147_v31, %s522_s26 }
 0x192   :  { %475 = vset.pattern.permute.xlu1 %v510_v1 }
 0x1dc   :  { %v155_v36 = vpop.permute.xlu2 %154 }
 0x1f4   :  { %v162_v33 = vpop.permute.xlu1 %161 }
 0x1f5   :  { %v150_v34 = vpop.permute.xlu0 %149 }
 0x1f6   :  { %v164_v35 = vsel %vm152_vm5, %v150_v34, %v162_v33  ;;  %v153_v40 = vsel %vm152_vm5, %v147_v31, %v150_v34 }
 0x1f7   :  { %187 = vmatpush.msra.mxu1 %v164_v35 }
 0x1fc   :  { %v168_v41 = vpop.permute.xlu1 %167 }
 0x1fd   :  { %v158_v37 = vpop.permute.xlu0 %157 }
 0x1fe   :  { %v160_v38 = vsel %vm152_vm5, %v155_v36, %v158_v37  ;;  %v58_v37 = vld [vmem:[%s738_s11] sm:$0xf] }
 0x1ff   :  { %188 = vmatpush.msra.mxu1 %v160_v38 }
 0x201   :  { %189 = vmatpush.msra.mxu1 %v153_v40 }
 0x202   :  { %449 = vmatmul.msk.f32.vlgmr.msra.gmra.mxu1 %vm170_vm6, %v50_v39 }
 0x27f   :  { %v191_v42 = vpop.f32.mrf.mxu1 }
 0x280   :  { %v192_v43 = vadd.f32 %v191_v42, %v168_v41 }
 0x282   :  { %480 = vtanh.f32 %v192_v43 }
 0x288   :  { %v481_v45 = vpop.eup %480 }
 0x289   :  { %v195_v46 = vsub.f32 %v446_v44, %v481_v45 }
 0x28b   :  { %211 = vperm.xlu1 %475, %v195_v46   ;;  %205 = vrot.lane.b32.xlu0 %v195_v46, %s514_s16  ;;  %328 = vst.msk [vmem:[%s740_s13] sm:$0xf] %vm327_vm7, %v195_v46  ;;  %v370_v13 = vand.u32 2147483647, %v195_v46 }
 0x28c   :  { %198 = vperm.xlu2 %473, %v195_v46  }
 0x28d   :  { %v371_v14 = vsel %vm327_vm7, %v370_v13, 0.0 }
 0x293   :  { %477 = vset.pattern.permute.xlu1 %v515_v4  ;;  %202 = vperm.xlu0 %476, %v195_v46   ;;  %v52_v4 = vld [vmem:[%s732_s5] sm:$0xff] }
 0x294   :  { %218 = vrot.lane.b32.xlu2 %v195_v46, %s513_s15  ;;  %215 = vperm.xlu1 %477, %v195_v46  }
 0x29b   :  { %479 = vset.pattern.permute.xlu0 %v511_v2 }
 0x29c   :  { %478 = vset.pattern.permute.xlu1 %v511_v2 }
 0x2e6   :  { %v199_v47 = vpop.permute.xlu2 %198 }
 0x2ee   :  { %v219_v50 = vpop.permute.xlu2 %218 }
 0x2fd   :  { %v212_v48 = vpop.permute.xlu1 %211  ;;  %v206_v49 = vpop.permute.xlu0 %205 }
 0x2fe   :  { %v208_v51 = vsel %vm71_vm0, %v199_v47, %v206_v49  ;;  %v221_v53 = vsel %vm71_vm0, %v212_v48, %v219_v50 }
 0x305   :  { %v203_v52 = vpop.permute.xlu0 %202 }
 0x306   :  { %v216_v54 = vpop.permute.xlu1 %215  ;;  %v209_v55 = vsel %vm73_vm1, %v208_v51, %v203_v52 }
 0x307   :  { %229 = vrot.lane.b32.xlu2 %v209_v55, %s518_s19  ;;  %v222_v56 = vsel %vm73_vm1, %v221_v53, %v216_v54 }
 0x308   :  { %239 = vrot.lane.b32.xlu0 %v222_v56, %s520_s21  ;;  %232 = vrot.lane.b32.xlu1 %v222_v56, %s516_s17 }
 0x30f   :  { %236 = vrot.lane.b32.xlu2 %v209_v55, %s517_s18 }
 0x310   :  { %224 = vrot.lane.b32.xlu1 %v222_v56, %s519_s20 }
 0x317   :  { %249 = vperm.xlu2 %473, %v53_v57  }
 0x361   :  { %v230_v58 = vpop.permute.xlu2 %229 }
 0x369   :  { %v237_v59 = vpop.permute.xlu2 %236 }
 0x371   :  { %v250_v6 = vpop.permute.xlu2 %249 }
 0x37a   :  { %v240_v60 = vpop.permute.xlu0 %239  ;;  %v233_v61 = vpop.permute.xlu1 %232 }
 0x37b   :  { %v242_v62 = vsel %vm73_vm1, %v237_v59, %v240_v60  ;;  %v235_v63 = vsel %vm73_vm1, %v230_v58, %v233_v61 }
 0x37c   :  { %450 = vmatpush.msk.msra.mxu2 %vm111_vm2, %v242_v62  ;;  %v244_v1 = vrot.slane %v235_v63, 4 }
 0x382   :  { %v225_v2 = vpop.permute.xlu1 %224 }
 0x383   :  { %v227_v3 = vsel %vm73_vm1, %v209_v55, %v225_v2 }
 0x384   :  { %v246_v5 = vsel %vm111_vm2, %v227_v3, %v244_v1 }
 0x385   :  { %273 = vmatpush.msra.mxu2 %v246_v5 }
 0x386   :  { %451 = vmatmul.msk.f32.vlgmr.msra.gmra.mxu2 %vm118_vm3, %v52_v4 }
 0x409   :  { %v275_v7 = vpop.f32.mrf.mxu2 }
 0x40a   :  { %v276_v8 = vadd.f32 %v275_v7, %v250_v6 }
 0x40c   :  { %vm278_vm8 = vcmp.gt.f32.partialorder %v276_v8, 0.0  ;;  %v279_v9 = vmul.f32 0.01, %v276_v8 }
 0x40e   :  { %v280_v10 = vsel %vm278_vm8, %v276_v8, %v279_v9 }
 0x40f   :  { %286 = vrot.lane.b32.xlu2 %v280_v10, %s518_s19  ;;  %293 = vrot.lane.b32.xlu1 %v280_v10, %s521_s25 }
 0x410   :  { %282 = vrot.lane.b32.xlu0 %v280_v10, %s517_s18 }
 0x417   :  { %331 = vperm.xlu2 %473, %v56_v11   ;;  %299 = vperm.xlu1 %478, %v55_v15  }
 0x418   :  { %289 = vrot.lane.b32.xlu0 %v280_v10, %s522_s26  ;;  %s433_s26 = sshll.u32 %s741_s14, 4  ;;  %s434_s26 = int_to_ptr.hbm [resolvable:$true] %s433_s26 }
 0x420   :  { %337 = vperm.xlu0 %479, %v57_v16  }
 0x440   :  { %404 = vadd.xlane.f32.xlu2 %v403_v12 }
 0x441   :  { %394 = vadd.xlane.f32.xlu1 %v393_v25 }
 0x448   :  { %372 = vadd.xlane.f32.xlu2 %v371_v14 }
 0x469   :  { %v287_v20 = vpop.permute.xlu2 %286 }
 0x471   :  { %v332_v31 = vpop.permute.xlu2 %331 }
 0x481   :  { %v294_v17 = vpop.permute.xlu1 %293 }
 0x482   :  { %v283_v18 = vpop.permute.xlu0 %282 }
 0x483   :  { %v296_v19 = vsel %vm152_vm5, %v283_v18, %v294_v17  ;;  %v285_v24 = vsel %vm152_vm5, %v280_v10, %v283_v18 }
 0x484   :  { %318 = vmatpush.msra.mxu3 %v296_v19 }
 0x489   :  { %v300_v26 = vpop.permute.xlu1 %299 }
 0x48a   :  { %v290_v21 = vpop.permute.xlu0 %289 }
 0x48b   :  { %v292_v22 = vsel %vm152_vm5, %v287_v20, %v290_v21 }
 0x48c   :  { %319 = vmatpush.msra.mxu3 %v292_v22 }
 0x48e   :  { %320 = vmatpush.msra.mxu3 %v285_v24 }
 0x48f   :  { %452 = vmatmul.msk.f32.vlgmr.msra.gmra.mxu3 %vm170_vm6, %v54_v23 }
 0x492   :  { %v338_v32 = vpop.permute.xlu0 %337 }
 0x4b3   :  { %v405_v38 = vpop.xlane.xlu2 %404 }
 0x4b4   :  { %v395_v39 = vpop.xlane.xlu1 %394 }
 0x4b5   :  { %v396_v40 = vsel %vm111_vm2, %v395_v39, 0.0 }
 0x4b6   :  { %v397_v43 = vrot.slane %v396_v40, 4 }
 0x4b8   :  { %v398_v46 = vadd.f32 %v397_v43, %v396_v40 }
 0x4ba   :  { %v399_v49 = vrot.slane %v398_v46, 2 }
 0x4bb   :  { %v373_v42 = vpop.xlane.xlu2 %372 }
 0x4bc   :  { %v374_v44 = vsel %vm111_vm2, %v373_v42, 0.0  ;;  %v400_v52 = vadd.f32 %v399_v49, %v398_v46 }
 0x4bd   :  { %v375_v47 = vrot.slane %v374_v44, 4 }
 0x4be   :  { %v401_v57 = vrot.slane %v400_v52, 1 }
 0x4bf   :  { %v376_v50 = vadd.f32 %v375_v47, %v374_v44 }
 0x4c0   :  { %v402_v62 = vadd.f32 %v401_v57, %v400_v52 }
 0x4c1   :  { %v377_v53 = vrot.slane %v376_v50, 2 }
 0x4c3   :  { %v378_v59 = vadd.f32 %v377_v53, %v376_v50 }
 0x4c5   :  { %v379_v1 = vrot.slane %v378_v59, 1 }
 0x4c7   :  { %v380_v5 = vadd.f32 %v379_v1, %v378_v59 }
 0x4c9   :  { %v381_v9 = vmul.f32 0.015625, %v380_v5 }
 0x4cb   :  { %v415_v13 = vmul.f32 0.1, %v381_v9 }
 0x512   :  { %v322_v27 = vpop.f32.mrf.mxu3 }
 0x513   :  { %v323_v28 = vadd.f32 %v322_v27, %v300_v26 }
 0x515   :  { %482 = vtanh.f32 %v323_v28 }
 0x51b   :  { %v483_v29 = vpop.eup %482 }
 0x51c   :  { %v326_v30 = vadd.f32 %v483_v29, %v602_v0  ;;  %v406_v0 = vsel %vm111_vm2, %v405_v38, 0.0 }
 0x51d   :  { %v407_v41 = vrot.slane %v406_v0, 4 }
 0x51e   :  { %v382_v33 = vsel %vm327_vm7, %v326_v30, 0.0  ;;  %v334_v34 = vmul.f32 %v332_v31, %v326_v30 }
 0x51f   :  { %383 = vadd.xlane.f32.xlu0 %v382_v33  ;;  %v408_v45 = vadd.f32 %v407_v41, %v406_v0 }
 0x520   :  { %v340_v35 = vadd.f32 %v338_v32, %v334_v34 }
 0x521   :  { %v409_v48 = vrot.slane %v408_v45, 2 }
 0x522   :  { %v341_v36 = vmax.f32 %v340_v35, 0.0 }
 0x523   :  { %v410_v51 = vadd.f32 %v409_v48, %v408_v45 }
 0x524   :  { %453 = vmatpush.msk.msrb.mxu0 %vm111_vm2, %v341_v36 }
 0x525   :  { %454 = vmatmul.msk.f32.vlgmr.msrb.gmra.mxu0 %vm342_vm9, %v58_v37  ;;  %v411_v56 = vrot.slane %v410_v51, 1 }
 0x527   :  { %v412_v61 = vadd.f32 %v411_v56, %v410_v51 }
 0x529   :  { %v413_v3 = vadd.f32 %v412_v61, %v402_v62 }
 0x52b   :  { %v414_v7 = vmul.f32 0.0078125, %v413_v3 }
 0x592   :  { %v384_v54 = vpop.xlane.xlu0 %383 }
 0x593   :  { %v385_v55 = vsel %vm111_vm2, %v384_v54, 0.0 }
 0x594   :  { %v386_v58 = vrot.slane %v385_v55, 4 }
 0x596   :  { %v387_v60 = vadd.f32 %v386_v58, %v385_v55 }
 0x598   :  { %v388_v63 = vrot.slane %v387_v60, 2 }
 0x59a   :  { %v389_v2 = vadd.f32 %v388_v63, %v387_v60 }
 0x59c   :  { %v390_v4 = vrot.slane %v389_v2, 1 }
 0x59e   :  { %v391_v6 = vadd.f32 %v390_v4, %v389_v2 }
 0x5a0   :  { %v392_v8 = vmul.f32 0.015625, %v391_v6 }
 0x5a2   :  { %v416_v10 = vsub.f32 %v392_v8, %v414_v7  ;;  %v366_v11 = vpop.f32.mrf.mxu0 }
 0x5a3   :  { %369 = vst.msk [vmem:[%s739_s12] sm:$0xf] %vm327_vm7, %v366_v11 }
 0x5a4   :  { %v417_v12 = vand.u32 2147483647, %v416_v10 }
 0x5a6   :  { %v418_v14 = vmul.f32 0.1, %v417_v12 }
 0x5a8   :  { %v419_v15 = vadd.f32 %v418_v14, %v415_v13 }
 0x5aa   :  { %421 = vst.msk [vmem:[#allocation2] sm:$0x1] %vm420_vm10, %v419_v15 }
 0x5ab   :  { %436 = dma.vmem_to_hbm [thread:$0]  %s432_s24, 16, %s434_s26, [#allocation3]  }
 0x5ac   :  { %508 = dma.done.wait [#allocation3], 16  }
 0x5ad   :  { %509 = vsyncadd [#allocation3], 4294967280 }
 0x5ae   :  { %445 = vsyncpa [#allocation3], 1 }

</bundles_post_ra>
